<compile_context>
chip_gen: v6e
topology: v6e:2x2x1
jax: 0.10.0
libtpu: 0.0.40
codegen_flags: <defaults>
</compile_context>

<pallas_src>
import jax
import jax.numpy as jnp
import numpy as np
from jax.experimental import pallas as pl
from jax.experimental.pallas import tpu as pltpu

# operator codes for the pre-compiled ruleset
OP_PASS, OP_LT, OP_GT, OP_LE, OP_GE, OP_EQ, OP_NE = 0, 1, 2, 3, 4, 5, 6

LANE = 128


def ruleset_kernel(x_ref, w_ref, thr_ref, opw_ref, s2_ref, lab0_ref, group_ref,
                   out_ref):
    """One batch tile of the rule-set forward pass.

    x_ref    : [TB, F]            input samples (batch tile)
    w_ref    : [F, Rpad + RPpad]  fused contraction matrix = [samples.T | one-hot]
    thr_ref  : [1, RPpad]         per-predicate thresholds
    opw_ref  : [4, RPpad]         per-predicate op weights (w_lt, w_gt, w_eq, w_const)
    s2_ref   : [1, Rpad]          sum(samples**2, axis=1)  (3e30 for padded rules)
    lab0_ref : [1, Rpad]          1.0 where rule_label[0] is set
    group_ref: [RPpad, Rpad]      predicate -> rule membership matrix
    out_ref  : [TB, 2]            2-class one-hot output
    """
    x = x_ref[...]
    w = w_ref[...]
    thr = thr_ref[...]
    opw = opw_ref[...]
    s2 = s2_ref[...]
    lab0 = lab0_ref[...]
    group = group_ref[...]

    r_pad = s2.shape[1]                     # multiple of 128 -> aligned slices

    # ---- single fused MXU contraction over F -> [TB, Rpad + RPpad] ----
    xw = jnp.dot(x, w, preferred_element_type=jnp.float32)
    xs = xw[:, :r_pad]                      # [TB, Rpad]  x @ samples.T (distances)
    vals = xw[:, r_pad:]                    # [TB, RPpad] gathered feature values

    # ---- calc_order: squared distance; 1/F scale is monotone (order only) ----
    x2 = jnp.sum(x * x, axis=1, keepdims=True)            # [TB, 1]
    dists = x2 + s2 - 2.0 * xs                             # [TB, Rpad]

    # ---- predicate evaluation via precomputed op-weight rows ----
    # LT:(1,0,0,0) GT:(0,1,0,0) LE:(1,0,1,0) GE:(0,1,1,0) EQ:(0,0,1,0)
    # NE:(1,1,0,0) PASS:(0,0,0,1); padded predicates: all-zero -> always "fail"
    # but their group rows are zero so they never affect a real rule.
    lt = (vals < thr).astype(jnp.float32)
    gt = (vals > thr).astype(jnp.float32)
    eq = (vals == thr).astype(jnp.float32)
    pass_f = opw[0:1] * lt + opw[1:2] * gt + opw[2:3] * eq + opw[3:4]
    fail = 1.0 - pass_f                                    # [TB, RPpad]

    # ---- per-rule conjunction: count failed predicates per rule (MXU) ----
    fail_count = jnp.dot(fail, group, preferred_element_type=jnp.float32)
    fired = fail_count < 0.5                               # [TB, Rpad]

    # ---- closest firing rule (reorder=True) ----
    big = jnp.float32(1e30)
    key = jnp.where(fired, dists, big)                     # padded rules: ~3e30
    kmin = jnp.min(key, axis=1, keepdims=True)             # [TB, 1]
    any_f = kmin < big                                     # [TB, 1]
    lab = jnp.sum(jnp.where(key == kmin, lab0, 0.0),
                  axis=1, keepdims=True)                   # [TB, 1]

    out0 = jnp.where(any_f & (lab > 0.5), 1.0, 0.0)
    out1 = jnp.where(any_f & (lab <= 0.5), 1.0, 0.0)
    out_ref[:, 0:1] = out0.astype(out_ref.dtype)
    out_ref[:, 1:2] = out1.astype(out_ref.dtype)


def _round_up(v, m):
    return ((v + m - 1) // m) * m


def precompile_rules(samples, feat, op, thr, label0):
    """Fold the (static) ruleset into dense, lane-padded kernel matrices."""
    samples = np.asarray(samples, np.float32)        # [R, F]
    feat = np.asarray(feat, np.int32)                # [R, P]
    op = np.asarray(op, np.int32)                    # [R, P]
    thr = np.asarray(thr, np.float32)                # [R, P]
    R, F = samples.shape
    P = feat.shape[1]
    RP = R * P

    r_pad = max(LANE, _round_up(R, LANE))
    rp_pad = max(LANE, _round_up(RP, LANE))

    feat_f = feat.reshape(RP)
    op_f = op.reshape(RP)

    # samples.T block, lane-padded: [F, Rpad]
    s_t = np.zeros((F, r_pad), np.float32)
    s_t[:, :R] = samples.T

    # gather one-hot, transposed and lane-padded: [F, RPpad]
    onehot_t = np.zeros((F, rp_pad), np.float32)
    onehot_t[feat_f, np.arange(RP)] = 1.0

    # fused F-contraction matrix, both blocks 128-lane aligned: [F, Rpad+RPpad]
    w_fused = np.concatenate([s_t, onehot_t], axis=1).astype(np.float32)

    thr_pad = np.zeros((1, rp_pad), np.float32)
    thr_pad[0, :RP] = thr.reshape(RP)

    # per-predicate op weights [4, RPpad]: rows = (w_lt, w_gt, w_eq, w_const)
    opw = np.zeros((4, rp_pad), np.float32)
    opw[0, :RP] = np.isin(op_f, [OP_LT, OP_LE, OP_NE]).astype(np.float32)
    opw[1, :RP] = np.isin(op_f, [OP_GT, OP_GE, OP_NE]).astype(np.float32)
    opw[2, :RP] = np.isin(op_f, [OP_LE, OP_GE, OP_EQ]).astype(np.float32)
    opw[3, :RP] = (op_f == OP_PASS).astype(np.float32)

    # padded rule columns get a huge s2 so their distance key (>=3e30) can
    # never beat a real fired rule (<1e30 sentinel) nor flip any_f.
    s2 = np.full((1, r_pad), 3e30, np.float32)
    s2[0, :R] = np.sum(samples * samples, axis=1)

    # predicate -> rule membership [RPpad, Rpad]
    group = np.zeros((rp_pad, r_pad), np.float32)
    group[np.arange(RP), np.arange(RP) // P] = 1.0

    lab0 = np.zeros((1, r_pad), np.float32)
    lab0[0, :R] = np.asarray(label0, np.float32).reshape(R)

    return (jnp.asarray(w_fused), jnp.asarray(thr_pad), jnp.asarray(opw),
            jnp.asarray(s2), jnp.asarray(lab0), jnp.asarray(group))


@jax.jit
def ruleset_forward(x, w_fused, thr_flat, opw, s2, lab0, group):
    B, F = x.shape
    r_pad = lab0.shape[1]
    rp_pad = thr_flat.shape[1]
    cols = r_pad + rp_pad

    # Batch tile: as large as a ~40 MiB live-intermediate budget allows (cap
    # 8192 rows), but no larger than round_up(cdiv(B,2), 8) so big batches use
    # >= 2 grid steps (keeps both v7x TensorCores busy); always a multiple of 8.
    bytes_per_row = 4 * (2 * F + cols + 2 * rp_pad + 4 * r_pad + 8)
    budget = 40 * 1024 * 1024
    tb_cap = max(8, min(8192, (budget // bytes_per_row) // 8 * 8))
    half = _round_up((B + 1) // 2, 8)
    TB = max(8, min(tb_cap, half))

    # No wrapper-side padding of x: Pallas masks the ragged last block; padded
    # rows only feed output rows that lie past B and are dropped.
    out = pl.pallas_call(
        ruleset_kernel,
        out_shape=jax.ShapeDtypeStruct((B, 2), jnp.float32),
        grid=(pl.cdiv(B, TB),),
        in_specs=[
            pl.BlockSpec((TB, F), lambda i: (i, 0)),          # x (tiled over batch)
            pl.BlockSpec((F, cols), lambda i: (0, 0)),        # fused rule matrix
            pl.BlockSpec((1, rp_pad), lambda i: (0, 0)),      # thresholds
            pl.BlockSpec((4, rp_pad), lambda i: (0, 0)),      # op weights
            pl.BlockSpec((1, r_pad), lambda i: (0, 0)),       # s2
            pl.BlockSpec((1, r_pad), lambda i: (0, 0)),       # label0
            pl.BlockSpec((rp_pad, r_pad), lambda i: (0, 0)),  # group matrix
        ],
        out_specs=pl.BlockSpec((TB, 2), lambda i: (i, 0)),
        compiler_params=pltpu.CompilerParams(
            dimension_semantics=("parallel",),
            vmem_limit_bytes=48 * 1024 * 1024),
    )(x, w_fused, thr_flat, opw, s2, lab0, group)
    return out


def ref_forward(x, samples, feat, op, thr, label0):
    """Pure numpy re-implementation of the torch forward semantics."""
    x = np.asarray(x, np.float32)
    samples = np.asarray(samples, np.float32)
    B, F = x.shape
    R, P = feat.shape
    out = np.zeros((B, 2), np.float32)
    for b in range(B):
        dists = np.sum((samples - x[b]) ** 2, axis=1) / F   # calc_order
        order = np.argsort(dists)
        for r in order:
            ok = True
            for p in range(P):
                o = int(op[r, p])
                v = np.float32(x[b, int(feat[r, p])])
                t = np.float32(thr[r, p])
                if o == OP_LT:   pr = v < t
                elif o == OP_GT: pr = v > t
                elif o == OP_LE: pr = v <= t
                elif o == OP_GE: pr = v >= t
                elif o == OP_EQ: pr = v == t
                elif o == OP_NE: pr = v != t
                else:            pr = True
                ok = ok and bool(pr)
            if ok:
                if label0[0, r] > 0.5:
                    out[b, 0] = 1.0
                else:
                    out[b, 1] = 1.0
                break
    return out


if __name__ == "__main__":
    B, F, R, P = 8, 16, 8, 4

    key = jax.random.PRNGKey(0)
    k1, k2, k3, k4 = jax.random.split(key, 4)

    # inputs: feature 0 is categorical (integer-valued), rest continuous
    x = jax.random.normal(k1, (B, F), dtype=jnp.float32)
    x = x.at[:, 0].set(
        jnp.floor(jax.random.uniform(k2, (B,), dtype=jnp.float32) * 4.0))

    # rule anchor samples (used only for the reorder-by-distance step)
    samples = jax.random.normal(k3, (R, F), dtype=jnp.float32)
    samples = samples.at[:, 0].set(
        jnp.floor(jax.random.uniform(k4, (R,), dtype=jnp.float32) * 4.0))

    # pre-compiled ruleset: (feature_idx, op_code, threshold) per predicate,
    # padded with OP_PASS.  Equivalent to strings like
    # "f3 < 0.5 AND f5 >= -0.3", "cat0 = category_2", "-1.0 <= f4 <= 1.0", ...
    feat = np.zeros((R, P), np.int32)
    op = np.zeros((R, P), np.int32)
    thr = np.zeros((R, P), np.float32)

    def set_rule(r, preds):
        for p, (f, o, t) in enumerate(preds):
            feat[r, p], op[r, p], thr[r, p] = f, o, t

    set_rule(0, [(3, OP_LT, 0.5), (5, OP_GE, -0.3)])
    set_rule(1, [(0, OP_EQ, 2.0)])                                   # categorical
    set_rule(2, [(1, OP_GT, 0.0), (2, OP_LE, 1.0), (7, OP_NE, 0.0)])
    set_rule(3, [(4, OP_GE, -1.0), (4, OP_LE, 1.0)])                 # range rule
    set_rule(4, [(0, OP_EQ, 0.0), (6, OP_LT, 0.2)])
    set_rule(5, [(8, OP_GT, 1.5)])
    set_rule(6, [(9, OP_LT, -1.5)])
    set_rule(7, [(10, OP_GE, 0.0), (11, OP_GE, 0.0), (12, OP_GE, 0.0)])

    # rule_labels[:, 0] indicator (class-0 one-hot component)
    label0 = np.array([[1., 0., 1., 0., 1., 0., 1., 0.]], np.float32)  # [1,R]

    rule_pack = precompile_rules(np.asarray(samples), feat, op, thr, label0)

    out = ruleset_forward(x, *rule_pack)
    out = jax.block_until_ready(out)

    expected = ref_forward(np.asarray(x), np.asarray(samples), feat, op, thr,
                           label0)
    np.testing.assert_allclose(np.asarray(out), expected, atol=1e-6)

    print("KERNEL_OK")
</pallas_src>

<mosaic_0001>
module attributes {stable_mosaic.version = 11 : i64} {
  func.func @ruleset_kernel(%arg0: i32, %arg1: memref<8x16xf32, #tpu.memory_space<vmem>>, %arg2: memref<16x256xf32, #tpu.memory_space<vmem>>, %arg3: memref<1x128xf32, #tpu.memory_space<vmem>>, %arg4: memref<4x128xf32, #tpu.memory_space<vmem>>, %arg5: memref<1x128xf32, #tpu.memory_space<vmem>>, %arg6: memref<1x128xf32, #tpu.memory_space<vmem>>, %arg7: memref<128x128xf32, #tpu.memory_space<vmem>>, %arg8: memref<8x2xf32, #tpu.memory_space<vmem>>) attributes {dimension_semantics = [#tpu.dimension_semantics<parallel>], iteration_bounds = array<i64: 1>, scalar_prefetch = 0 : i64, scratch_operands = 0 : i64, tpu.core_type = #tpu.core_type<tc>, window_params = [{transform_indices = @transform_0, window_bounds = array<i64: 8, 16>}, {pipeline_mode = #tpu.pipeline_mode<synchronous>, transform_indices = @transform_1, window_bounds = array<i64: 16, 256>}, {pipeline_mode = #tpu.pipeline_mode<synchronous>, transform_indices = @transform_2, window_bounds = array<i64: 1, 128>}, {pipeline_mode = #tpu.pipeline_mode<synchronous>, transform_indices = @transform_3, window_bounds = array<i64: 4, 128>}, {pipeline_mode = #tpu.pipeline_mode<synchronous>, transform_indices = @transform_4, window_bounds = array<i64: 1, 128>}, {pipeline_mode = #tpu.pipeline_mode<synchronous>, transform_indices = @transform_5, window_bounds = array<i64: 1, 128>}, {pipeline_mode = #tpu.pipeline_mode<synchronous>, transform_indices = @transform_6, window_bounds = array<i64: 128, 128>}, {transform_indices = @transform_7, window_bounds = array<i64: 8, 2>}]} {
    %c0 = arith.constant 0 : index
    %c0_0 = arith.constant 0 : index
    %0 = vector.load %arg1[%c0, %c0_0] : memref<8x16xf32, #tpu.memory_space<vmem>>, vector<8x16xf32>
    %c0_1 = arith.constant 0 : index
    %c0_2 = arith.constant 0 : index
    %1 = vector.load %arg2[%c0_1, %c0_2] : memref<16x256xf32, #tpu.memory_space<vmem>>, vector<16x256xf32>
    %c0_3 = arith.constant 0 : index
    %c0_4 = arith.constant 0 : index
    %2 = vector.load %arg3[%c0_3, %c0_4] : memref<1x128xf32, #tpu.memory_space<vmem>>, vector<1x128xf32>
    %c0_5 = arith.constant 0 : index
    %c0_6 = arith.constant 0 : index
    %3 = vector.load %arg4[%c0_5, %c0_6] : memref<4x128xf32, #tpu.memory_space<vmem>>, vector<4x128xf32>
    %c0_7 = arith.constant 0 : index
    %c0_8 = arith.constant 0 : index
    %4 = vector.load %arg5[%c0_7, %c0_8] : memref<1x128xf32, #tpu.memory_space<vmem>>, vector<1x128xf32>
    %c0_9 = arith.constant 0 : index
    %c0_10 = arith.constant 0 : index
    %5 = vector.load %arg6[%c0_9, %c0_10] : memref<1x128xf32, #tpu.memory_space<vmem>>, vector<1x128xf32>
    %c0_11 = arith.constant 0 : index
    %c0_12 = arith.constant 0 : index
    %6 = vector.load %arg7[%c0_11, %c0_12] : memref<128x128xf32, #tpu.memory_space<vmem>>, vector<128x128xf32>
    %cst = arith.constant dense<0.000000e+00> : vector<8x256xf32>
    %7 = tpu.matmul %0, %1, %cst {dimension_numbers = #tpu.dot_dimension_numbers<[1], [0], [0], [1], [0, 0, 1, 1], [], []>} : vector<8x16xf32>, vector<16x256xf32>, vector<8x256xf32> -> vector<8x256xf32>
    %8 = vector.extract_strided_slice %7 {offsets = [0, 0], sizes = [8, 128], strides = [1, 1]} : vector<8x256xf32> to vector<8x128xf32>
    %9 = vector.extract_strided_slice %7 {offsets = [0, 128], sizes = [8, 128], strides = [1, 1]} : vector<8x256xf32> to vector<8x128xf32>
    %10 = arith.mulf %0, %0 : vector<8x16xf32>
    %cst_13 = arith.constant dense<0.000000e+00> : vector<8xf32>
    %11 = vector.multi_reduction <add>, %10, %cst_13 [1] : vector<8x16xf32> to vector<8xf32>
    %12 = vector.shape_cast %11 : vector<8xf32> to vector<8x1xf32>
    %13 = vector.broadcast %12 : vector<8x1xf32> to vector<8x128xf32>
    %14 = vector.broadcast %4 : vector<1x128xf32> to vector<8x128xf32>
    %15 = arith.addf %13, %14 : vector<8x128xf32>
    %cst_14 = arith.constant 2.000000e+00 : f32
    %16 = vector.broadcast %cst_14 : f32 to vector<8x128xf32>
    %17 = arith.mulf %16, %8 : vector<8x128xf32>
    %18 = arith.subf %15, %17 : vector<8x128xf32>
    %19 = vector.broadcast %2 : vector<1x128xf32> to vector<8x128xf32>
    %20 = arith.cmpf olt, %9, %19 : vector<8x128xf32>
    %21 = arith.extui %20 : vector<8x128xi1> to vector<8x128xi32>
    %22 = arith.sitofp %21 : vector<8x128xi32> to vector<8x128xf32>
    %23 = vector.broadcast %2 : vector<1x128xf32> to vector<8x128xf32>
    %24 = arith.cmpf ogt, %9, %23 : vector<8x128xf32>
    %25 = arith.extui %24 : vector<8x128xi1> to vector<8x128xi32>
    %26 = arith.sitofp %25 : vector<8x128xi32> to vector<8x128xf32>
    %27 = vector.broadcast %2 : vector<1x128xf32> to vector<8x128xf32>
    %28 = arith.cmpf oeq, %9, %27 : vector<8x128xf32>
    %29 = arith.extui %28 : vector<8x128xi1> to vector<8x128xi32>
    %30 = arith.sitofp %29 : vector<8x128xi32> to vector<8x128xf32>
    %31 = vector.extract_strided_slice %3 {offsets = [0, 0], sizes = [1, 128], strides = [1, 1]} : vector<4x128xf32> to vector<1x128xf32>
    %32 = vector.broadcast %31 : vector<1x128xf32> to vector<8x128xf32>
    %33 = arith.mulf %32, %22 : vector<8x128xf32>
    %34 = vector.extract_strided_slice %3 {offsets = [1, 0], sizes = [1, 128], strides = [1, 1]} : vector<4x128xf32> to vector<1x128xf32>
    %35 = vector.broadcast %34 : vector<1x128xf32> to vector<8x128xf32>
    %36 = arith.mulf %35, %26 : vector<8x128xf32>
    %37 = arith.addf %33, %36 : vector<8x128xf32>
    %38 = vector.extract_strided_slice %3 {offsets = [2, 0], sizes = [1, 128], strides = [1, 1]} : vector<4x128xf32> to vector<1x128xf32>
    %39 = vector.broadcast %38 : vector<1x128xf32> to vector<8x128xf32>
    %40 = arith.mulf %39, %30 : vector<8x128xf32>
    %41 = arith.addf %37, %40 : vector<8x128xf32>
    %42 = vector.extract_strided_slice %3 {offsets = [3, 0], sizes = [1, 128], strides = [1, 1]} : vector<4x128xf32> to vector<1x128xf32>
    %43 = vector.broadcast %42 : vector<1x128xf32> to vector<8x128xf32>
    %44 = arith.addf %41, %43 : vector<8x128xf32>
    %cst_15 = arith.constant 1.000000e+00 : f32
    %45 = vector.broadcast %cst_15 : f32 to vector<8x128xf32>
    %46 = arith.subf %45, %44 : vector<8x128xf32>
    %cst_16 = arith.constant dense<0.000000e+00> : vector<8x128xf32>
    %47 = tpu.matmul %46, %6, %cst_16 {dimension_numbers = #tpu.dot_dimension_numbers<[1], [0], [0], [1], [0, 0, 1, 1], [], []>} : vector<8x128xf32>, vector<128x128xf32>, vector<8x128xf32> -> vector<8x128xf32>
    %cst_17 = arith.constant 5.000000e-01 : f32
    %48 = vector.broadcast %cst_17 : f32 to vector<8x128xf32>
    %49 = arith.cmpf olt, %47, %48 : vector<8x128xf32>
    %cst_18 = arith.constant 1.000000e+30 : f32
    %50 = vector.broadcast %cst_18 : f32 to vector<8x128xf32>
    %51 = arith.select %49, %18, %50 : vector<8x128xi1>, vector<8x128xf32>
    %cst_19 = arith.constant dense<0x7F800000> : vector<8xf32>
    %52 = vector.multi_reduction <minimumf>, %51, %cst_19 [1] : vector<8x128xf32> to vector<8xf32>
    %53 = vector.shape_cast %52 : vector<8xf32> to vector<8x1xf32>
    %cst_20 = arith.constant 1.000000e+30 : f32
    %54 = vector.broadcast %cst_20 : f32 to vector<8x1xf32>
    %55 = arith.cmpf olt, %53, %54 : vector<8x1xf32>
    %56 = vector.broadcast %53 : vector<8x1xf32> to vector<8x128xf32>
    %57 = arith.cmpf oeq, %51, %56 : vector<8x128xf32>
    %cst_21 = arith.constant 0.000000e+00 : f32
    %58 = vector.shape_cast %5 : vector<1x128xf32> to vector<1x128xf32>
    %59 = vector.broadcast %58 : vector<1x128xf32> to vector<8x128xf32>
    %60 = vector.broadcast %cst_21 : f32 to vector<8x128xf32>
    %61 = arith.select %57, %59, %60 : vector<8x128xi1>, vector<8x128xf32>
    %cst_22 = arith.constant dense<0.000000e+00> : vector<8xf32>
    %62 = vector.multi_reduction <add>, %61, %cst_22 [1] : vector<8x128xf32> to vector<8xf32>
    %63 = vector.shape_cast %62 : vector<8xf32> to vector<8x1xf32>
    %cst_23 = arith.constant 5.000000e-01 : f32
    %64 = vector.broadcast %cst_23 : f32 to vector<8x1xf32>
    %65 = arith.cmpf ogt, %63, %64 : vector<8x1xf32>
    %66 = arith.andi %55, %65 : vector<8x1xi1>
    %cst_24 = arith.constant 1.000000e+00 : f32
    %cst_25 = arith.constant 0.000000e+00 : f32
    %67 = vector.broadcast %cst_24 : f32 to vector<8x1xf32>
    %68 = vector.broadcast %cst_25 : f32 to vector<8x1xf32>
    %69 = arith.select %66, %67, %68 : vector<8x1xi1>, vector<8x1xf32>
    %cst_26 = arith.constant 5.000000e-01 : f32
    %70 = vector.broadcast %cst_26 : f32 to vector<8x1xf32>
    %71 = arith.cmpf ole, %63, %70 : vector<8x1xf32>
    %72 = arith.andi %55, %71 : vector<8x1xi1>
    %cst_27 = arith.constant 1.000000e+00 : f32
    %cst_28 = arith.constant 0.000000e+00 : f32
    %73 = vector.broadcast %cst_27 : f32 to vector<8x1xf32>
    %74 = vector.broadcast %cst_28 : f32 to vector<8x1xf32>
    %75 = arith.select %72, %73, %74 : vector<8x1xi1>, vector<8x1xf32>
    %c0_29 = arith.constant 0 : index
    %c0_30 = arith.constant 0 : index
    %76 = vector.load %arg8[%c0_29, %c0_30] : memref<8x2xf32, #tpu.memory_space<vmem>>, vector<8x1xf32>
    tpu.vector_store %arg8[%c0_29, %c0_30], %69 {strides = array<i32>} : memref<8x2xf32, #tpu.memory_space<vmem>>, vector<8x1xf32>,
    %c0_31 = arith.constant 0 : index
    %c1 = arith.constant 1 : index
    %77 = vector.load %arg8[%c0_31, %c1] : memref<8x2xf32, #tpu.memory_space<vmem>>, vector<8x1xf32>
    tpu.vector_store %arg8[%c0_31, %c1], %75 {strides = array<i32>} : memref<8x2xf32, #tpu.memory_space<vmem>>, vector<8x1xf32>,
    return
  }
  func.func @transform_0(%arg0: i32) -> (i32, i32) {
    %c0_i32 = arith.constant 0 : i32
    %c0_i32_0 = arith.constant 0 : i32
    return %arg0, %c0_i32 : i32, i32
  }
  func.func @transform_1(%arg0: i32) -> (i32, i32) {
    %c0_i32 = arith.constant 0 : i32
    %c0_i32_0 = arith.constant 0 : i32
    %c0_i32_1 = arith.constant 0 : i32
    return %c0_i32, %c0_i32_0 : i32, i32
  }
  func.func @transform_2(%arg0: i32) -> (i32, i32) {
    %c0_i32 = arith.constant 0 : i32
    %c0_i32_0 = arith.constant 0 : i32
    %c0_i32_1 = arith.constant 0 : i32
    return %c0_i32, %c0_i32_0 : i32, i32
  }
  func.func @transform_3(%arg0: i32) -> (i32, i32) {
    %c0_i32 = arith.constant 0 : i32
    %c0_i32_0 = arith.constant 0 : i32
    %c0_i32_1 = arith.constant 0 : i32
    return %c0_i32, %c0_i32_0 : i32, i32
  }
  func.func @transform_4(%arg0: i32) -> (i32, i32) {
    %c0_i32 = arith.constant 0 : i32
    %c0_i32_0 = arith.constant 0 : i32
    %c0_i32_1 = arith.constant 0 : i32
    return %c0_i32, %c0_i32_0 : i32, i32
  }
  func.func @transform_5(%arg0: i32) -> (i32, i32) {
    %c0_i32 = arith.constant 0 : i32
    %c0_i32_0 = arith.constant 0 : i32
    %c0_i32_1 = arith.constant 0 : i32
    return %c0_i32, %c0_i32_0 : i32, i32
  }
  func.func @transform_6(%arg0: i32) -> (i32, i32) {
    %c0_i32 = arith.constant 0 : i32
    %c0_i32_0 = arith.constant 0 : i32
    %c0_i32_1 = arith.constant 0 : i32
    return %c0_i32, %c0_i32_0 : i32, i32
  }
  func.func @transform_7(%arg0: i32) -> (i32, i32) {
    %c0_i32 = arith.constant 0 : i32
    %c0_i32_0 = arith.constant 0 : i32
    return %arg0, %c0_i32 : i32, i32
  }
}

</mosaic_0001>

<bundles_post_ra>
// kernel: ruleset_forward.1
= control target key start
LH: loop header
LB: loop body
LE: loop exit
PB: predicated region body
PF: predicated region fallthrough
CT: control target
= control target key end

     0   :  { %12 = vsyncpa [#allocation3], 0  ;;  %s548_s0 = inlined_call_operand.hbm [shape: f32[8,16], index: 0, kind: input, shape index: {}]   ;;  %s549_s1 = inlined_call_operand.hbm [shape: f32[16,256], index: 1, kind: input, shape index: {}]   ;;  %s550_s2 = inlined_call_operand.vmem [shape: f32[1,128], index: 2, kind: input, shape index: {}]   ;;  %s551_s3 = inlined_call_operand.vmem [shape: f32[4,128], index: 3, kind: input, shape index: {}]   ;;  %s552_s4 = inlined_call_operand.vmem [shape: f32[1,128], index: 4, kind: input, shape index: {}]   ;;  %s553_s5 = inlined_call_operand.vmem [shape: f32[1,128], index: 5, kind: input, shape index: {}]   ;;  %s554_s6 = inlined_call_operand.hbm [shape: f32[128,128], index: 6, kind: input, shape index: {}]   ;;  %s555_s7 = inlined_call_operand.vmem [shape: f32[8,2], index: 7, kind: output, shape index: {}]  }
   0x1   :  { %13 = vsyncpa [#allocation5], 0  ;;  %s449_s24 = smov [#allocation4]  }
   0x2   :  { %s29_s25 = sshll.u32 %s449_s24, 4  ;;  %s30_s25 = int_to_ptr.vmem [resolvable:$true] %s29_s25 }
   0x3   :  { %s393_s26 = scalar_lea.vmem %s30_s25, 512  ;;  %p398_p1 = scmp.lt.s32.totalorder %s30_s25, %s30_s25 }
   0x4   :  { %p394_p0 = scmp.ne.s32.totalorder %s30_s25, %s393_s26  ;;  %p399_p2 = scmp.lt.s32.totalorder %s393_s26, %s393_s26 }
   0x6   :  { %p400_p3 = por %p399_p2, %p398_p1 }
   0x8   :  { %p401_p4 = pnand %p400_p3, %p394_p0 }
   0xa   :  { %404 = shalt.err (!%p401_p4)
}
   0xb   :  { %s450_s27 = smov 256   ;;  %s451_s28 = smov 16  }
   0xc   :  { %35 = dma.hbm_to_vmem [thread:$0]  %s549_s1, 512, %s30_s25, [#allocation5], %s450_s27, %s450_s27, %s451_s28  }
   0xd   :  { %s452_s8 = smov [#allocation2]   ;;  %s453_s10 = smov [#allocation6]  }
   0xe   :  { %s20_s9 = sshll.u32 %s452_s8, 4  ;;  %s49_s11 = sshll.u32 %s453_s10, 4  ;;  %s21_s9 = int_to_ptr.vmem [resolvable:$true] %s20_s9  ;;  %s50_s11 = int_to_ptr.vmem [resolvable:$true] %s49_s11 }
   0xf   :  { %s413_s12 = scalar_lea.vmem %s21_s9, 128  ;;  %p418_p6 = scmp.lt.s32.totalorder %s21_s9, %s21_s9 }
  0x10   :  { %p414_p5 = scmp.ne.s32.totalorder %s21_s9, %s413_s12  ;;  %p419_p7 = scmp.lt.s32.totalorder %s413_s12, %s413_s12 }
  0x12   :  { %p420_p8 = por %p419_p7, %p418_p6 }
  0x14   :  { %p421_p9 = pnand %p420_p8, %p414_p5 }
  0x16   :  { %424 = shalt.err (!%p421_p9)
}
  0x17   :  { %23 = dma.hbm_to_vmem [thread:$0]  %s548_s0, 128, %s21_s9, [#allocation3]  }
  0x18   :  { %s433_s15 = scalar_lea.vmem %s50_s11, 2048  ;;  %p438_p11 = scmp.lt.s32.totalorder %s50_s11, %s50_s11 }
  0x19   :  { %p434_p10 = scmp.ne.s32.totalorder %s50_s11, %s433_s15  ;;  %p439_p12 = scmp.lt.s32.totalorder %s433_s15, %s433_s15 }
  0x1b   :  { %p440_p13 = por %p439_p12, %p438_p11 }
  0x1d   :  { %p441_p0 = pnand %p440_p13, %p434_p10 }
  0x1f   :  { %444 = shalt.err (!%p441_p0)
}
  0x20   :  { %s454_s1 = smov 128   ;;  %s455_s16 = smov 8  }
  0x21   :  { %55 = dma.hbm_to_vmem [thread:$0]  %s554_s6, 2048, %s50_s11, [#allocation5], %s454_s1, %s454_s1, %s455_s16  }
  0x22   :  { %445 = dma.done.wait [#allocation3], 128  }
  0x23   :  { %446 = vsyncadd [#allocation3], 4294967168 }
  0x24   :  { %447 = dma.done.wait [#allocation5], 2560  }
  0x25   :  { %448 = vsyncadd [#allocation5], 4294964736  ;;  %v456_v0 = vmov 0.0   ;;  %v69_v1 = vld [vmem:[#allocation4 + $0x18] sm:$0xff]  ;;  %v68_v2 = vld [vmem:[#allocation4 + $0x10] sm:$0xff]  ;;  %vm90_vm0 = vcmask 130048   ;;  %v193_v24 = vlaneseq }
  0x26   :  { %158 = vmatprep.mubr.f32.mxu0 %v456_v0  ;;  %341 = vmatprep.subr.mxu1 %v456_v0  ;;  %v67_v3 = vld [vmem:[#allocation4 + $0x8] sm:$0xff]  ;;  %v66_v4 = vld [vmem:[#allocation4] sm:$0xff]  ;;  %v65_v5 = vld [vmem:[#allocation2] sm:$0xff]  ;;  %vm457_vm1 = vmmov 0   ;;  %vm307_vm8 = vcmask 7168   ;;  %vm309_vm11 = vcmask 15368  }
  0x27   :  { %122 = vmatprep.subr.mxu0 %v69_v1  ;;  %v89_v6 = vld [vmem:[#allocation6 + $0x78] sm:$0xff]  ;;  %v165_v7 = vmul.f32 %v65_v5, %v65_v5  ;;  %v88_v8 = vld [vmem:[#allocation6 + $0x70] sm:$0xff]  ;;  %v87_v10 = vld [vmem:[#allocation6 + $0x68] sm:$0xff]  ;;  %373 = vmatprep.mubr.msk.f32.mxu1 %vm457_vm1, %v456_v0  ;;  %v194_v25 = vshrl.u32 %v193_v24, 7 }
  0x28   :  { %123 = vmatpush1.msra.mxu0 %v68_v2  ;;  %342 = vmatpush3.msra.mxu1 %v89_v6  ;;  %v86_v11 = vld [vmem:[#allocation6 + $0x60] sm:$0xff]  ;;  %v85_v12 = vld [vmem:[#allocation6 + $0x58] sm:$0xff]  ;;  %v84_v13 = vld [vmem:[#allocation6 + $0x50] sm:$0xff] }
  0x29   :  { %124 = vmatprep.subr.mxu0 %v67_v3  ;;  %343 = vmatprep.subr.mxu1 %v456_v0  ;;  %v166_v9 = vsel %vm90_vm0, %v165_v7, 0.0  ;;  %v83_v14 = vld [vmem:[#allocation6 + $0x48] sm:$0xff]  ;;  %v82_v15 = vld [vmem:[#allocation6 + $0x40] sm:$0xff]  ;;  %v81_v16 = vld [vmem:[#allocation6 + $0x38] sm:$0xff]  ;;  %v195_v26 = vsub.s32 0, %v194_v25  ;;  %v200_v27 = vsub.s32 1, %v194_v25 }
  0x2a   :  { %125 = vmatpush1.msra.mxu0 %v66_v4  ;;  %344 = vmatpush3.msra.mxu1 %v88_v8  ;;  %v80_v17 = vld [vmem:[#allocation6 + $0x30] sm:$0xff]  ;;  %v79_v18 = vld [vmem:[#allocation6 + $0x28] sm:$0xff]  ;;  %v78_v19 = vld [vmem:[#allocation6 + $0x20] sm:$0xff]  ;;  %v206_v29 = vsub.s32 2, %v194_v25  ;;  %v212_v36 = vsub.s32 3, %v194_v25 }
  0x2b   :  { %317 = vmatmul.mubr.msk.f32.vlgmr.msra.gmra.mxu0 %vm90_vm0, %v65_v5  ;;  %167 = vadd.xlane.f32.xlu0 %v166_v9  ;;  %v77_v20 = vld [vmem:[#allocation6 + $0x18] sm:$0xff]  ;;  %v76_v21 = vld [vmem:[#allocation6 + $0x10] sm:$0xff]  ;;  %v75_v22 = vld [vmem:[#allocation6 + $0x8] sm:$0xff] }
  0x2c   :  { %345 = vmatprep.subr.mxu1 %v456_v0  ;;  %v74_v23 = vld [vmem:[#allocation6] sm:$0xff]  ;;  %v71_v28 = vld [vmem:[%s551_s3] sm:$0xf] }
  0x2d   :  { %346 = vmatpush3.msra.mxu1 %v87_v10  ;;  %v319_v31 = vld [vmem:[%s550_s2] ss:$0 sm:$0xff]  ;;  %v196_v32 = vrot.slane %v71_v28, %v195_v26  ;;  %v201_v33 = vrot.slane %v71_v28, %v200_v27  ;;  %v207_v35 = vrot.slane %v71_v28, %v206_v29  ;;  %v213_v44 = vrot.slane %v71_v28, %v212_v36 }
  0x2e   :  { %347 = vmatprep.subr.mxu1 %v456_v0  ;;  %v318_v48 = vld [vmem:[%s552_s4] ss:$0 sm:$0xff] }
  0x2f   :  { %348 = vmatpush3.msra.mxu1 %v86_v11  ;;  %v323_v56 = vld [vmem:[%s553_s5] ss:$0 sm:$0xff] }
  0x30   :  { %349 = vmatprep.subr.mxu1 %v456_v0 }
  0x31   :  { %350 = vmatpush3.msra.mxu1 %v85_v12 }
  0x32   :  { %351 = vmatprep.subr.mxu1 %v456_v0 }
  0x33   :  { %352 = vmatpush3.msra.mxu1 %v84_v13 }
  0x34   :  { %353 = vmatprep.subr.mxu1 %v456_v0 }
  0x35   :  { %354 = vmatpush3.msra.mxu1 %v83_v14 }
  0x36   :  { %355 = vmatprep.subr.mxu1 %v456_v0 }
  0x37   :  { %356 = vmatpush3.msra.mxu1 %v82_v15 }
  0x38   :  { %357 = vmatprep.subr.mxu1 %v456_v0 }
  0x39   :  { %358 = vmatpush3.msra.mxu1 %v81_v16 }
  0x3a   :  { %359 = vmatprep.subr.mxu1 %v456_v0 }
  0x3b   :  { %360 = vmatpush3.msra.mxu1 %v80_v17 }
  0x3c   :  { %361 = vmatprep.subr.mxu1 %v456_v0 }
  0x3d   :  { %362 = vmatpush3.msra.mxu1 %v79_v18 }
  0x3e   :  { %363 = vmatprep.subr.mxu1 %v456_v0 }
  0x3f   :  { %364 = vmatpush3.msra.mxu1 %v78_v19 }
  0x40   :  { %365 = vmatprep.subr.mxu1 %v456_v0 }
  0x41   :  { %366 = vmatpush3.msra.mxu1 %v77_v20 }
  0x42   :  { %367 = vmatprep.subr.mxu1 %v456_v0 }
  0x43   :  { %368 = vmatpush3.msra.mxu1 %v76_v21 }
  0x44   :  { %369 = vmatprep.subr.mxu1 %v456_v0 }
  0x45   :  { %370 = vmatpush3.msra.mxu1 %v75_v22 }
  0x46   :  { %371 = vmatprep.subr.mxu1 %v456_v0 }
  0x47   :  { %372 = vmatpush3.msra.mxu1 %v74_v23 }
  0xb4   :  { %v168_v49 = vpop.xlane.xlu0 %167 }
  0xb5   :  { %v175_v50 = vadd.f32 %v318_v48, %v168_v49 }
  0xeb   :  { %v160_v30 = vpop.f32.mrf.mxu0 }
  0xec   :  { %v176_v51 = vmul.f32 2.0, %v160_v30 }
  0xed   :  { %v162_v34 = vpop.f32.mrf.mxu0 }
  0xee   :  { %vm184_vm2 = vcmp.lt.f32.partialorder %v162_v34, %v319_v31  ;;  %vm187_vm3 = vcmp.gt.f32.partialorder %v162_v34, %v319_v31  ;;  %vm190_vm4 = vcmp.eq.f32.partialorder %v162_v34, %v319_v31  ;;  %v177_v53 = vsub.f32 %v175_v50, %v176_v51 }
  0xef   :  { %v320_v37 = vsel %vm184_vm2, 1.0, %v456_v0  ;;  %v321_v38 = vsel %vm187_vm3, 1.0, %v456_v0  ;;  %v322_v39 = vsel %vm190_vm4, 1.0, %v456_v0 }
  0xf0   :  { %v197_v40 = vmul.f32 %v320_v37, %v196_v32  ;;  %v202_v41 = vmul.f32 %v321_v38, %v201_v33  ;;  %v208_v43 = vmul.f32 %v322_v39, %v207_v35 }
  0xf2   :  { %v203_v42 = vadd.f32 %v202_v41, %v197_v40 }
  0xf4   :  { %v209_v45 = vadd.f32 %v208_v43, %v203_v42 }
  0xf6   :  { %v214_v46 = vadd.f32 %v213_v44, %v209_v45 }
  0xf8   :  { %v215_v47 = vsub.f32 1.0, %v214_v46 }
  0xfa   :  { %374 = vmatmul.mubr.f32.vlgmr.msra.gmra.mxu1 %v215_v47 }
 0x1ba   :  { %v282_v52 = vpop.f32.mrf.mxu1 }
 0x1bb   :  { %vm286_vm5 = vcmp.lt.f32.partialorder %v282_v52, 0.5 }
 0x1bc   :  { %v375_v54 = vpop.f32.mrf.mxu1  ;;  %v287_v55 = vsel %vm286_vm5, %v177_v53, 1e+30 }
 0x1bd   :  { %288 = vmin.xlane.f32.xlu0 %v287_v55 }
 0x246   :  { %v289_v57 = vpop.xlane.xlu0 %288 }
 0x247   :  { %vm291_vm6 = vcmp.eq.f32.partialorder %v287_v55, %v289_v57  ;;  %vm290_vm7 = vcmp.lt.f32.partialorder %v289_v57, 1e+30 }
 0x248   :  { %v298_v58 = vsel %vm291_vm6, %v323_v56, 0.0 }
 0x249   :  { %299 = vadd.xlane.f32.xlu1 %v298_v58 }
 0x2d2   :  { %v300_v59 = vpop.xlane.xlu1 %299 }
 0x2d3   :  { %vm301_vm9 = vcmp.gt.f32.partialorder %v300_v59, 0.5  ;;  %vm304_vm10 = vcmp.le.f32.partialorder %v300_v59, 0.5 }
 0x2d4   :  { %vm302_vm12 = vmand %vm290_vm7, %vm301_vm9 }
 0x2d5   :  { %v303_v60 = vsel %vm302_vm12, 1.0, %v456_v0  ;;  %vm305_vm13 = vmand %vm290_vm7, %vm304_vm10 }
 0x2d6   :  { %v306_v61 = vsel %vm305_vm13, 1.0, %v456_v0  ;;  %308 = vst.msk [vmem:[%s555_s7] sm:$0xff] %vm307_vm8, %v303_v60 }
 0x2d7   :  { %310 = vst.msk [vmem:[%s555_s7] sm:$0xff] %vm309_vm11, %v306_v61 }
 0x2d8   :  { %315 = vsyncpa [#allocation3], 1 }
 0x2d9   :  { %316 = vsyncpa [#allocation5], 1 }

</bundles_post_ra>
